<compile_context>
chip_gen: v7x
topology: tpu7x:2x2x1
jax: 0.10.0
libtpu: 0.0.40
codegen_flags: <defaults>
</compile_context>

<pallas_src>
import functools

import jax
import jax.numpy as jnp
from jax.experimental import pallas as pl
from jax.experimental.pallas import tpu as pltpu


def _round_up(n, m):
    return ((n + m - 1) // m) * m


def _clamp_vmem(est_bytes):
    # 2x margin over the static block estimate, clamped to a range that is safe
    # on v5e / v6e / v7x scoped-VMEM budgets.
    return int(min(48 * 1024 * 1024, max(2 * est_bytes, 8 * 1024 * 1024)))


# --------------------------------------------------------------------------
# Pass 1: fused key/query + value projection (1x1 convs, BN folded, ReLU on qk)
# --------------------------------------------------------------------------
def _proj_kernel(x_ref, wkv_ref, bkv_ref, qk_out_ref, v_out_ref, *, kcp):
    x = x_ref[0]                                                    # (T, C) bf16
    y = jnp.dot(x, wkv_ref[...],
                preferred_element_type=jnp.float32) + bkv_ref[...]  # (T, Kcp+Vcp) f32
    qk = jnp.maximum(y[:, :kcp], 0.0)                               # ReLU (f_key/f_query)
    v = y[:, kcp:]                                                  # f_value
    qk_out_ref[0] = qk.astype(qk_out_ref.dtype)
    v_out_ref[0] = v.astype(v_out_ref.dtype)


# --------------------------------------------------------------------------
# Pass 2: flash-style attention with fused output projection W
# --------------------------------------------------------------------------
def _flash_attn_kernel(q_ref, k_ref, v_ref, ww_ref, bw_ref, o_ref,
                       m_sc, l_sc, acc_sc, *, scale, hw, tk, needs_mask):
    ki = pl.program_id(2)

    @pl.when(ki == 0)
    def _():
        m_sc[...] = jnp.full_like(m_sc, -jnp.inf)
        l_sc[...] = jnp.zeros_like(l_sc)
        acc_sc[...] = jnp.zeros_like(acc_sc)

    q = q_ref[0]                                                    # (TQ, Kcp) bf16
    k = k_ref[0]                                                    # (TK, Kcp) bf16

    # sim tile: NT dot_general (contract last dims) -> no transpose / relayout.
    s = jax.lax.dot_general(q, k, (((1,), (1,)), ((), ())),
                            preferred_element_type=jnp.float32) * scale   # (TQ, TK) f32

    if needs_mask:
        col = jax.lax.broadcasted_iota(jnp.int32, s.shape, 1) + ki * tk
        s = jnp.where(col < hw, s, -jnp.inf)

    m_prev = m_sc[...]                                              # (TQ, 1)
    m_new = jnp.maximum(m_prev, s.max(axis=-1, keepdims=True))
    alpha = jnp.exp(m_prev - m_new)
    p = jnp.exp(s - m_new)                                          # (TQ, TK) f32

    l_sc[...] = alpha * l_sc[...] + p.sum(axis=-1, keepdims=True)
    acc_sc[...] = alpha * acc_sc[...] + jnp.dot(
        p.astype(jnp.bfloat16), v_ref[0], preferred_element_type=jnp.float32)
    m_sc[...] = m_new

    @pl.when(ki == pl.num_programs(2) - 1)
    def _():
        ctx = acc_sc[...] * pl.reciprocal(l_sc[...], approx=True)   # (TQ, Vcp) f32
        out = jnp.dot(ctx.astype(jnp.bfloat16), ww_ref[...],
                      preferred_element_type=jnp.float32) + bw_ref[...]
        o_ref[0] = out.astype(o_ref.dtype)


# --------------------------------------------------------------------------
# Wrapper
# --------------------------------------------------------------------------
def self_attention_block(x_nchw, params, key_channels, *, tile=128):
    """x_nchw: (B, C, H, W) float32. Returns (B, out_channels, H, W) float32."""
    B, C, H, W = x_nchw.shape
    HW = H * W

    wk, bk = params["wk"], params["bk"]          # (C, Kc), (1, Kc)  (BN folded)
    wv, bv = params["wv"], params["bv"]          # (C, Vc), (1, Vc)
    ww, bw = params["ww"], params["bw"]          # (Vc, Co), (1, Co)
    Kc, Vc, Co = wk.shape[1], wv.shape[1], ww.shape[1]

    # Pad channel dims to lane multiples (128) for lane-dense MXU / stores.
    Kcp, Vcp, Cop = _round_up(Kc, 128), _round_up(Vc, 128), _round_up(Co, 128)

    # Token tile (sublane dim) and padded token count.
    T = min(tile, _round_up(HW, 16))
    HWp = _round_up(HW, T)
    nt = HWp // T
    needs_mask = (HWp != HW)

    # NCHW -> (B, HW, C) tokens (glue, plain JAX); bf16 feed for the MXU.
    x_tok = jnp.transpose(x_nchw.reshape(B, C, HW), (0, 2, 1))
    if HWp != HW:
        x_tok = jnp.pad(x_tok, ((0, 0), (0, HWp - HW), (0, 0)))
    x_tok = x_tok.astype(jnp.bfloat16)

    # Fused (and zero-padded) projection weights.
    wkv = jnp.concatenate(
        [jnp.pad(wk, ((0, 0), (0, Kcp - Kc))),
         jnp.pad(wv, ((0, 0), (0, Vcp - Vc)))], axis=1).astype(jnp.bfloat16)   # (C, Kcp+Vcp)
    bkv = jnp.concatenate(
        [jnp.pad(bk, ((0, 0), (0, Kcp - Kc))),
         jnp.pad(bv, ((0, 0), (0, Vcp - Vc)))], axis=1).astype(jnp.float32)    # (1, Kcp+Vcp)
    wwp = jnp.pad(ww, ((0, Vcp - Vc), (0, Cop - Co))).astype(jnp.bfloat16)     # (Vcp, Cop)
    bwp = jnp.pad(bw, ((0, 0), (0, Cop - Co))).astype(jnp.float32)             # (1, Cop)

    # ---------------- pass 1: fused projections ----------------
    proj_vmem = 2 * (T * C * 2 + C * (Kcp + Vcp) * 2 + (Kcp + Vcp) * 4
                     + T * Kcp * 2 + T * Vcp * 2)
    qk_tok, v_tok = pl.pallas_call(
        functools.partial(_proj_kernel, kcp=Kcp),
        out_shape=(jax.ShapeDtypeStruct((B, HWp, Kcp), jnp.bfloat16),
                   jax.ShapeDtypeStruct((B, HWp, Vcp), jnp.bfloat16)),
        grid_spec=pltpu.PrefetchScalarGridSpec(
            num_scalar_prefetch=0,
            grid=(B, nt),
            in_specs=[
                pl.BlockSpec((1, T, C), lambda b, t: (b, t, 0)),
                pl.BlockSpec((C, Kcp + Vcp), lambda b, t: (0, 0)),
                pl.BlockSpec((1, Kcp + Vcp), lambda b, t: (0, 0)),
            ],
            out_specs=[
                pl.BlockSpec((1, T, Kcp), lambda b, t: (b, t, 0)),
                pl.BlockSpec((1, T, Vcp), lambda b, t: (b, t, 0)),
            ]),
        compiler_params=pltpu.CompilerParams(
            dimension_semantics=("parallel", "parallel"),
            vmem_limit_bytes=_clamp_vmem(proj_vmem)),
    )(x_tok, wkv, bkv)

    # ---------------- pass 2: flash attention + fused W ----------------
    att_vmem = (2 * (2 * T * Kcp * 2 + T * Vcp * 2 + Vcp * Cop * 2
                     + Cop * 4 + T * Cop * 4)
                + 2 * T * 4 + T * Vcp * 4)
    scale = float(key_channels) ** -0.5
    out_tok = pl.pallas_call(
        functools.partial(_flash_attn_kernel, scale=scale, hw=HW, tk=T,
                          needs_mask=needs_mask),
        out_shape=jax.ShapeDtypeStruct((B, HWp, Cop), jnp.float32),
        grid_spec=pltpu.PrefetchScalarGridSpec(
            num_scalar_prefetch=0,
            grid=(B, nt, nt),
            in_specs=[
                pl.BlockSpec((1, T, Kcp), lambda b, qi, ki: (b, qi, 0)),   # query tile
                pl.BlockSpec((1, T, Kcp), lambda b, qi, ki: (b, ki, 0)),   # key tile
                pl.BlockSpec((1, T, Vcp), lambda b, qi, ki: (b, ki, 0)),   # value tile
                pl.BlockSpec((Vcp, Cop), lambda b, qi, ki: (0, 0)),        # W weight
                pl.BlockSpec((1, Cop), lambda b, qi, ki: (0, 0)),          # W bias
            ],
            out_specs=pl.BlockSpec((1, T, Cop), lambda b, qi, ki: (b, qi, 0)),
            scratch_shapes=[
                pltpu.VMEM((T, 1), jnp.float32),    # m (running max)
                pltpu.VMEM((T, 1), jnp.float32),    # l (running denom)
                pltpu.VMEM((T, Vcp), jnp.float32),  # acc
            ]),
        compiler_params=pltpu.CompilerParams(
            dimension_semantics=("parallel", "parallel", "arbitrary"),
            vmem_limit_bytes=_clamp_vmem(att_vmem)),
    )(qk_tok, qk_tok, v_tok, wwp, bwp)

    # (B, HWp, Cop) -> (B, Co, H, W)
    out = out_tok[:, :HW, :Co]
    return jnp.transpose(out, (0, 2, 1)).reshape(B, Co, H, W)


# --------------------------------------------------------------------------
# Parameters / reference
# --------------------------------------------------------------------------
def make_params(key, in_channels, key_channels, value_channels, out_channels):
    """Deterministic parameter construction (shapes from the module __init__)."""
    ks = jax.random.split(key, 8)
    # f_key conv: (Kc, C, 1, 1) -> stored as (C, Kc) matrix
    wk_conv = 0.1 * jax.random.normal(ks[0], (in_channels, key_channels), jnp.float32)
    bk_conv = 0.1 * jax.random.normal(ks[1], (key_channels,), jnp.float32)
    # BatchNorm2d(Kc), eval mode with deterministic running stats / affine
    gamma = 1.0 + 0.1 * jax.random.normal(ks[2], (key_channels,), jnp.float32)
    beta = 0.1 * jax.random.normal(ks[3], (key_channels,), jnp.float32)
    run_mean = 0.05 * jax.random.normal(ks[4], (key_channels,), jnp.float32)
    run_var = jnp.abs(1.0 + 0.1 * jax.random.normal(ks[5], (key_channels,), jnp.float32))
    eps = 1e-5
    scale = gamma / jnp.sqrt(run_var + eps)
    wk = wk_conv * scale[None, :]                      # BN folded into conv
    bk = ((bk_conv - run_mean) * scale + beta)[None, :]

    # f_value conv: (Vc, C, 1, 1) -> (C, Vc)
    wv = 0.1 * jax.random.normal(ks[6], (in_channels, value_channels), jnp.float32)
    bv = (0.1 * jax.random.normal(ks[7], (value_channels,), jnp.float32))[None, :]

    # W conv: (Co, Vc, 1, 1). NOTE: the original module inits W to zero
    # (nn.init.constant(0)); we use small deterministic nonzero values so the
    # kernel output is non-trivial while shapes/semantics match.
    kw = jax.random.split(jax.random.fold_in(key, 99), 2)
    ww = 0.1 * jax.random.normal(kw[0], (value_channels, out_channels), jnp.float32)
    bw = (0.1 * jax.random.normal(kw[1], (out_channels,)))[None, :].astype(jnp.float32)

    return {"wk": wk, "bk": bk, "wv": wv, "bv": bv, "ww": ww, "bw": bw}


def reference_jax(x_nchw, params, key_channels):
    """Pure-JAX f32 reference mirroring the PyTorch forward."""
    B, C, H, W = x_nchw.shape
    x = jnp.transpose(x_nchw.reshape(B, C, H * W), (0, 2, 1))       # (B, HW, C)
    qk = jnp.maximum(x @ params["wk"] + params["bk"], 0.0)          # (B, HW, Kc)
    v = x @ params["wv"] + params["bv"]                             # (B, HW, Vc)
    sim = jnp.einsum("bqc,bkc->bqk", qk, qk) * (key_channels ** -0.5)
    sim = jax.nn.softmax(sim, axis=-1)
    ctx = sim @ v                                                   # (B, HW, Vc)
    out = ctx @ params["ww"] + params["bw"]                         # (B, HW, Co)
    Co = out.shape[-1]
    return jnp.transpose(out, (0, 2, 1)).reshape(B, Co, H, W)


if __name__ == "__main__":
    # Small shapes consistent with the module's NCHW input; HW=256 exercises
    # multiple query tiles and multiple kv (online-softmax) steps with T=128.
    B, C, H, W = 2, 16, 16, 16
    key_channels, value_channels, out_channels = 32, 32, C  # out defaults to in_channels

    key = jax.random.PRNGKey(0)
    kx, kp = jax.random.split(key)
    x = jax.random.normal(kx, (B, C, H, W), jnp.float32)
    params = make_params(kp, C, key_channels, value_channels, out_channels)

    out = self_attention_block(x, params, key_channels)
    out = jax.block_until_ready(out)

    ref = reference_jax(x, params, key_channels)
    assert out.shape == (B, out_channels, H, W)
    # bf16 MXU inputs + approx reciprocal introduce small deviations vs f32 ref.
    err = float(jnp.max(jnp.abs(out - ref)))
    assert err < 5e-2, f"mismatch vs JAX reference: max|err|={err}"

    print("KERNEL_OK")
</pallas_src>

<mosaic_0001>
module attributes {stable_mosaic.version = 11 : i64} {
  func.func @_proj_kernel(%arg0: i32, %arg1: i32, %arg2: memref<1x128x16xbf16, #tpu.memory_space<vmem>>, %arg3: memref<16x256xbf16, #tpu.memory_space<vmem>>, %arg4: memref<1x256xf32, #tpu.memory_space<vmem>>, %arg5: memref<1x128x128xbf16, #tpu.memory_space<vmem>>, %arg6: memref<1x128x128xbf16, #tpu.memory_space<vmem>>) attributes {dimension_semantics = [#tpu.dimension_semantics<parallel>, #tpu.dimension_semantics<parallel>], iteration_bounds = array<i64: 2, 2>, scalar_prefetch = 0 : i64, scratch_operands = 0 : i64, tpu.core_type = #tpu.core_type<tc>, window_params = [{transform_indices = @transform_0, window_bounds = array<i64: 1, 128, 16>}, {pipeline_mode = #tpu.pipeline_mode<synchronous>, transform_indices = @transform_1, window_bounds = array<i64: 16, 256>}, {pipeline_mode = #tpu.pipeline_mode<synchronous>, transform_indices = @transform_2, window_bounds = array<i64: 1, 256>}, {transform_indices = @transform_3, window_bounds = array<i64: 1, 128, 128>}, {transform_indices = @transform_4, window_bounds = array<i64: 1, 128, 128>}]} {
    %c0 = arith.constant 0 : index
    %c0_0 = arith.constant 0 : index
    %c0_1 = arith.constant 0 : index
    %0 = vector.load %arg2[%c0, %c0_0, %c0_1] : memref<1x128x16xbf16, #tpu.memory_space<vmem>>, vector<1x128x16xbf16>
    %1 = vector.shape_cast %0 : vector<1x128x16xbf16> to vector<128x16xbf16>
    %c0_2 = arith.constant 0 : index
    %c0_3 = arith.constant 0 : index
    %2 = vector.load %arg3[%c0_2, %c0_3] : memref<16x256xbf16, #tpu.memory_space<vmem>>, vector<16x256xbf16>
    %cst = arith.constant dense<0.000000e+00> : vector<128x256xf32>
    %3 = tpu.matmul %1, %2, %cst {dimension_numbers = #tpu.dot_dimension_numbers<[1], [0], [0], [1], [0, 0, 1, 1], [], []>} : vector<128x16xbf16>, vector<16x256xbf16>, vector<128x256xf32> -> vector<128x256xf32>
    %c0_4 = arith.constant 0 : index
    %c0_5 = arith.constant 0 : index
    %4 = vector.load %arg4[%c0_4, %c0_5] : memref<1x256xf32, #tpu.memory_space<vmem>>, vector<1x256xf32>
    %5 = vector.broadcast %4 : vector<1x256xf32> to vector<128x256xf32>
    %6 = arith.addf %3, %5 : vector<128x256xf32>
    %7 = vector.extract_strided_slice %6 {offsets = [0, 0], sizes = [128, 128], strides = [1, 1]} : vector<128x256xf32> to vector<128x128xf32>
    %cst_6 = arith.constant 0.000000e+00 : f32
    %8 = vector.broadcast %cst_6 : f32 to vector<128x128xf32>
    %9 = arith.maximumf %7, %8 : vector<128x128xf32>
    %10 = vector.extract_strided_slice %6 {offsets = [0, 128], sizes = [128, 128], strides = [1, 1]} : vector<128x256xf32> to vector<128x128xf32>
    %11 = arith.truncf %9 : vector<128x128xf32> to vector<128x128xbf16>
    %c0_7 = arith.constant 0 : index
    %c0_8 = arith.constant 0 : index
    %c0_9 = arith.constant 0 : index
    %12 = vector.load %arg5[%c0_7, %c0_8, %c0_9] : memref<1x128x128xbf16, #tpu.memory_space<vmem>>, vector<1x128x128xbf16>
    %13 = vector.shape_cast %12 : vector<1x128x128xbf16> to vector<128x128xbf16>
    %14 = vector.shape_cast %11 : vector<128x128xbf16> to vector<1x128x128xbf16>
    tpu.vector_store %arg5[%c0_7, %c0_8, %c0_9], %14 {strides = array<i32>} : memref<1x128x128xbf16, #tpu.memory_space<vmem>>, vector<1x128x128xbf16>,
    %15 = arith.truncf %10 : vector<128x128xf32> to vector<128x128xbf16>
    %c0_10 = arith.constant 0 : index
    %c0_11 = arith.constant 0 : index
    %c0_12 = arith.constant 0 : index
    %16 = vector.load %arg6[%c0_10, %c0_11, %c0_12] : memref<1x128x128xbf16, #tpu.memory_space<vmem>>, vector<1x128x128xbf16>
    %17 = vector.shape_cast %16 : vector<1x128x128xbf16> to vector<128x128xbf16>
    %18 = vector.shape_cast %15 : vector<128x128xbf16> to vector<1x128x128xbf16>
    tpu.vector_store %arg6[%c0_10, %c0_11, %c0_12], %18 {strides = array<i32>} : memref<1x128x128xbf16, #tpu.memory_space<vmem>>, vector<1x128x128xbf16>,
    return
  }
  func.func @transform_0(%arg0: i32, %arg1: i32) -> (i32, i32, i32) {
    %c0_i32 = arith.constant 0 : i32
    %c0_i32_0 = arith.constant 0 : i32
    return %arg0, %arg1, %c0_i32 : i32, i32, i32
  }
  func.func @transform_1(%arg0: i32, %arg1: i32) -> (i32, i32) {
    %c0_i32 = arith.constant 0 : i32
    %c0_i32_0 = arith.constant 0 : i32
    %c0_i32_1 = arith.constant 0 : i32
    return %c0_i32, %c0_i32_0 : i32, i32
  }
  func.func @transform_2(%arg0: i32, %arg1: i32) -> (i32, i32) {
    %c0_i32 = arith.constant 0 : i32
    %c0_i32_0 = arith.constant 0 : i32
    %c0_i32_1 = arith.constant 0 : i32
    return %c0_i32, %c0_i32_0 : i32, i32
  }
  func.func @transform_3(%arg0: i32, %arg1: i32) -> (i32, i32, i32) {
    %c0_i32 = arith.constant 0 : i32
    %c0_i32_0 = arith.constant 0 : i32
    return %arg0, %arg1, %c0_i32 : i32, i32, i32
  }
  func.func @transform_4(%arg0: i32, %arg1: i32) -> (i32, i32, i32) {
    %c0_i32 = arith.constant 0 : i32
    %c0_i32_0 = arith.constant 0 : i32
    return %arg0, %arg1, %c0_i32 : i32, i32, i32
  }
}

</mosaic_0001>

<bundles_post_ra>
// kernel: tpu_custom_call.1
= control target key start
LH: loop header
LB: loop body
LE: loop exit
PB: predicated region body
PF: predicated region fallthrough
CT: control target
= control target key end

     0   :  { %10 = vsyncpa [#allocation3], 0  ;;  %s1499_s0 = inlined_call_operand.vmem [shape: bf16[2,256,16], index: 0, kind: input, shape index: {}]   ;;  %s1500_s1 = inlined_call_operand.vmem [shape: bf16[16,256], index: 1, kind: input, shape index: {}]   ;;  %s1501_s2 = inlined_call_operand.vmem [shape: f32[1,256], index: 2, kind: input, shape index: {}]   ;;  %s1502_s3 = inlined_call_operand.hbm [shape: bf16[2,256,128], index: 3, kind: output, shape index: {0}]   ;;  %s1503_s4 = inlined_call_operand.hbm [shape: bf16[2,256,128], index: 4, kind: output, shape index: {1}]  }
   0x1   :  { %12 = vsyncpa [#allocation3 + $0x1], 0 }
   0x2   :  { %13 = vsyncpa [#allocation5], 0 }
   0x3   :  { %15 = vsyncpa [#allocation5 + $0x1], 0  ;;  %s1238_s15 = smov 0   ;;  %s1240_s16 = smov 0  }
   0x4   :  { %s1242_s17 = smov 0   ;;  %s1244_s18 = smov 0  }
   0x5   :  { %s1246_s19 = smov 0   ;;  %s1248_s20 = smov 0  }
   0x6   :  { %s1250_s21 = smov 0   ;;  %s1252_s22 = smov 0  }
   0x7 LB: > { %s792_s23 = sadd.s32 4294967295, %s1206_s22   ;;  %s793_s24 = sadd.s32 4294967294, %s1206_s22   ;;  %s1206_s22 = sphi %s1252_s22, %s21_s22   ;;  %s1202_s21 = sphi %s1250_s21, %s1512_s21   ;;  %s1198_s20 = sphi %s1248_s20, %s1511_s20   ;;  %s1194_s19 = sphi %s1246_s19, %s1510_s19   ;;  %s1190_s18 = sphi %s1244_s18, %s1509_s18   ;;  %s1186_s17 = sphi %s1242_s17, %s1508_s17   ;;  %s1182_s16 = sphi %s1240_s16, %s1507_s16   ;;  %s1178_s15 = sphi %s1238_s15, %s1506_s15  }
   0x8   : > { %s30_s25 = sadd.s32 1, %s1198_s20  ;;  %s33_s26 = sadd.s32 1, %s1202_s21 }
   0x9   : > { %p31_p0 = scmp.ge.s32.totalorder %s30_s25, 2  ;;  %p122_p1 = scmp.ne.s32.totalorder %s1186_s17, %s1182_s16 }
   0xa   : > { %p123_p2 = scmp.eq.s32.totalorder %s792_s23, 3  ;;  %p128_p5 = scmp.ne.s32.totalorder %s1182_s16, %s1178_s15 }
   0xb   : > { %s1514_s25 = smov (%p31_p0, %s30_s25), 0  ;;  %s1516_s26 = smov (!%p31_p0, %s33_s26), %s1202_s21 }
   0xc   : > { %s108_s27 = ssub.s32 %s1198_s20, %s1514_s25  ;;  %p1289_p3 = por %p123_p2, %p122_p1 }
   0xd   : > { %p35_p4 = scmp.ge.s32.totalorder %s1516_s26, 2  ;;  %p129_p6 = scmp.eq.s32.totalorder %s793_s24, 3 }
   0xe   : > { %p796_p7 = scmp.ge.s32.totalorder %s1206_s22, 1  ;;  %p194_p9 = scmp.lt.s32.totalorder %s1206_s22, 5 }
   0xf   : > { %s1518_s26 = smov (%p35_p4, %s1516_s26), 0  ;;  %p1298_p8 = por %p129_p6, %p128_p5 }
  0x10   : > { %s107_s30 = ssub.s32 %s1202_s21, %s1518_s26  ;;  %s112_s5 = sadd.s32 1, %s1186_s17 }
  0x11   : > { %s109_s6 = sor.u32 %s108_s27, %s107_s30  ;;  %p195_p10 = pnand %p796_p7, %p194_p9 }
  0x12   : > { %p110_p11 = scmp.eq.s32.totalorder %s109_s6, 0  ;;  %v1069_v0 = vld [vmem:[%s1500_s1 + $0x4] ss:$8 sps:$4 sm:$0xff] (!%p195_p10)   ;;  %s1313_s10 = sshll.u32 (!%p195_p10), %s1190_s18, 4  ;;  %v1071_v1 = vld [vmem:[%s1500_s1] ss:$8 sps:$4 sm:$0xff] (!%p195_p10)   ;;  %v262_v11 = vlaneseq (!%p195_p10) }
  0x13   : > { %198 = sbr.rel (%p195_p10) target bundleno = 316 (0x13c), region = 32  ;;  %v1208_v2 = vmov (!%p195_p10), 0   ;;  %p230_p12 = scmp.lt.s32.totalorder (!%p195_p10), %s1194_s19, 1  ;;  %347 = vmatprep.subr.bf16.mxu0 (!%p195_p10), %v1069_v0  ;;  %988 = vmatprep.subr.bf16.mxu1 (!%p195_p10), %v1069_v0  ;;  %vm322_vm0 = vcmask (!%p195_p10), 130048   ;;  %v260_v14 = vld [vmem:[%s1501_s2] sm:$0x3] (!%p195_p10) }
  0x14   : > { %s1307_s7 = scalar_select %p110_p11, %s1186_s17, %s112_s5  }
  0x15   : > { %379 = vmatprep.mubr.bf16.mxu0 (!%p195_p10), %v1208_v2  ;;  %419 = vmatprep.mubr.bf16.mxu1 (!%p195_p10), %v1208_v2  ;;  %p232_p13 = scmp.lt.s32.totalorder (!%p195_p10), %s1313_s10, 31  ;;  %v263_v12 = vshrl.u32 (!%p195_p10), %v262_v11, 7  ;;  %s1339_s9 = sand.u32 (!%p195_p10), 1, %s1182_s16  }
  0x16   : > { %348 = vmatpush1.bf16.msra.mxu0 (!%p195_p10), %v1071_v1  ;;  %989 = vmatpush1.bf16.msra.mxu1 (!%p195_p10), %v1071_v1  ;;  %s797_s11 = sshll.u32 (!%p195_p10), %s1339_s9, 6 }
  0x17   : > { %v264_v13 = vsub.s32 (!%p195_p10), 0, %v263_v12  ;;  %v268_v15 = vsub.s32 (!%p195_p10), 1, %v263_v12  ;;  %s1352_s12 = scalar_lea.vmem (!%p195_p10), [#allocation4], %s797_s11 }
  0x19   : > { %v1336_v16 = vrot.slane (!%p195_p10), %v260_v14, %v264_v13  ;;  %v1341_v18 = vrot.slane (!%p195_p10), %v260_v14, %v268_v15 }
  0x1a   : > { %s231_s13 = scalar_select %p230_p12, %s1194_s19, 1 }
  0x1b   : > { %s233_s14 = scalar_select %p232_p13, %s1313_s10, 31 }
  0x1c   : > { %s800_s23 = sshll.u32 %s231_s13, 5  ;;  %s1355_s13 = scalar_lea.vmem [#allocation2], %s797_s11 }
  0x1d   : > { %s235_s18 = sadd.s32 %s800_s23, %s233_s14  ;;  %s855_s14 = sshll.u32 %s1194_s19, 5 }
  0x1e   : > { %s801_s24 = sshll.u32 %s235_s18, 2  ;;  %s1386_s23 = sadd.s32 %s855_s14, %s1313_s10 }
  0x1f   : > { %s237_s5 = scalar_lea.vmem %s1499_s0, %s801_s24  ;;  %s856_s19 = sshll.u32 %s1386_s23, 6 }
  0x20   : > { %v1072_v3 = vld [vmem:[%s237_s5] sm:$0xff]   ;;  %v1074_v5 = vld [vmem:[%s237_s5 + $0x8] sm:$0xff]   ;;  %v1076_v7 = vld [vmem:[%s237_s5 + $0x10] sm:$0xff]   ;;  %s675_s10 = sshll.u32 %s1352_s12, 4  ;;  %s657_s18 = sshll.u32 %s1355_s13, 4  ;;  %s1404_s10 = int_to_ptr.vmem [resolvable:$true] %s675_s10  ;;  %s1412_s18 = int_to_ptr.vmem [resolvable:$true] %s657_s18 }
  0x21   : > { %v1073_v4 = vld [vmem:[%s237_s5 + $0x20] sm:$0xff]   ;;  %812 = vmatmul.mubr.msk.bf16.vlgmr.msra.gmra.mrb[0].mxu0 %vm322_vm0, %v1072_v3  ;;  %v1075_v6 = vld [vmem:[%s237_s5 + $0x28] sm:$0xff]   ;;  %v1077_v8 = vld [vmem:[%s237_s5 + $0x30] sm:$0xff]   ;;  %s1402_s30 = scalar_lea.hbm %s1503_s4, %s856_s19  ;;  %s1410_s8 = scalar_lea.hbm %s1502_s3, %s856_s19 }
  0x22   : > { %816 = vmatmul.mubr.msk.bf16.vlgmr.msra.gmra.mrb[0].mxu1 %vm322_vm0, %v1073_v4  ;;  %389 = vmatprep.mubr.bf16.mxu0 %v1208_v2  ;;  %v1078_v9 = vld [vmem:[%s237_s5 + $0x18] sm:$0xff]   ;;  %s642_s11 = scalar_lea.sflag [#allocation5], %s1339_s9  ;;  %s1080_s14 = scalar_lea.vmem %s1404_s10, 1024 }
  0x23   : > { %429 = vmatprep.mubr.bf16.mxu1 %v1208_v2  ;;  %v1079_v10 = vld [vmem:[%s237_s5 + $0x38] sm:$0xff]   ;;  %p1081_p0 = scmp.ne.s32.totalorder %s1404_s10, %s1080_s14  ;;  %s1209_s23 = smov [#allocation4]  }
  0x24   : > { %s1084_s24 = sshll.u32 %s1209_s23, 4  ;;  %s1085_s24 = int_to_ptr.vmem [resolvable:$false] %s1084_s24 }
  0x25   : > { %p1082_p1 = pnand %p1081_p0, %p1289_p3  ;;  %s1086_s27 = scalar_lea.vmem %s1085_s24, 2048 }
  0x26   : > { %p1087_p4 = scmp.lt.s32.totalorder %s1404_s10, %s1085_s24  ;;  %p1088_p5 = scmp.lt.s32.totalorder %s1086_s27, %s1080_s14 }
  0x27   : > { %p1083_p2 = pneg %p1082_p1 }
  0x28   : > { %p1089_p6 = por %p1088_p5, %p1087_p4 }
  0x29   : > { %813 = vmatmul.mubr.msk.bf16.gmra.mrb[4].mxu0 %vm322_vm0, %v1074_v5 }
  0x2a   : > { %817 = vmatmul.mubr.msk.bf16.gmra.mrb[4].mxu1 %vm322_vm0, %v1075_v6  ;;  %399 = vmatprep.mubr.bf16.mxu0 %v1208_v2  ;;  %p1090_p7 = pnand %p1089_p6, %p1083_p2 }
  0x2b   : > { %439 = vmatprep.mubr.bf16.mxu1 %v1208_v2 }
  0x31   : > { %814 = vmatmul.mubr.msk.bf16.gmra.mrb[8].mxu0 %vm322_vm0, %v1076_v7 }
  0x32   : > { %818 = vmatmul.mubr.msk.bf16.gmra.mrb[8].mxu1 %vm322_vm0, %v1077_v8  ;;  %409 = vmatprep.mubr.bf16.mxu0 %v1208_v2 }
  0x33   : > { %449 = vmatprep.mubr.bf16.mxu1 %v1208_v2 }
  0x39   : > { %815 = vmatmul.mubr.msk.bf16.gmra.mrb[12].mxu0 %vm322_vm0, %v1078_v9 }
  0x3a   : > { %819 = vmatmul.mubr.msk.bf16.gmra.mrb[12].mxu1 %vm322_vm0, %v1079_v10 }
  0xf4   : > { %v381_v17 = vpop.f32.mrb[0].mxu0 }
  0xf5   : > { %v382_v19 = vadd.f32 %v381_v17, %v1336_v16  ;;  %v421_v20 = vpop.f32.mrb[0].mxu1  ;;  %v383_v21 = vpop.f32.mrb[1].mxu0 }
  0xf6   : > { %v422_v22 = vadd.f32 %v421_v20, %v1336_v16  ;;  %v423_v23 = vpop.f32.mrb[1].mxu1  ;;  %v385_v24 = vpop.f32.mrb[2].mxu0  ;;  %v384_v28 = vadd.f32 %v383_v21, %v1341_v18 }
  0xf7   : > { %v386_v25 = vadd.f32 %v385_v24, %v1336_v16  ;;  %v425_v26 = vpop.f32.mrb[2].mxu1  ;;  %v387_v27 = vpop.f32.mrb[3].mxu0  ;;  %v460_v32 = vmax.f32 %v382_v19, 0.0  ;;  %v424_v33 = vadd.f32 %v423_v23, %v1341_v18 }
  0xf8   : > { %v426_v29 = vadd.f32 %v425_v26, %v1336_v16  ;;  %v388_v30 = vadd.f32 %v387_v27, %v1341_v18  ;;  %v427_v31 = vpop.f32.mrb[3].mxu1  ;;  %v468_v36 = vmax.f32 %v422_v22, 0.0 }
  0xf9   : > { %v461_v34 = vmax.f32 %v386_v25, 0.0  ;;  %v428_v35 = vadd.f32 %v427_v31, %v1341_v18 }
  0xfa   : > { %v469_v37 = vmax.f32 %v426_v29, 0.0  ;;  %v937_v38 = vpack.c.bf16 %v388_v30, %v384_v28 }
  0xfb   : > { %v897_v39 = vpack.c.bf16 %v461_v34, %v460_v32  ;;  %v957_v40 = vpack.c.bf16 %v428_v35, %v424_v33 }
  0xfc   : > { %v917_v41 = vpack.c.bf16 %v469_v37, %v468_v36  ;;  %938 = vst [vmem:[%s1352_s12] sm:$0xff] %v937_v38   ;;  %v391_v42 = vpop.f32.mrb[4].mxu0 }
  0xfd   : > { %898 = vst [vmem:[%s1355_s13] sm:$0xff] %v897_v39   ;;  %984 = vst [vmem:[%s1352_s12 + $0x20] sm:$0xff] %v957_v40   ;;  %v392_v43 = vadd.f32 %v391_v42, %v1336_v16  ;;  %v431_v44 = vpop.f32.mrb[4].mxu1  ;;  %v393_v45 = vpop.f32.mrb[5].mxu0 }
  0xfe   : > { %977 = vst [vmem:[%s1355_s13 + $0x20] sm:$0xff] %v917_v41   ;;  %v432_v46 = vadd.f32 %v431_v44, %v1336_v16  ;;  %v433_v47 = vpop.f32.mrb[5].mxu1  ;;  %v395_v48 = vpop.f32.mrb[6].mxu0  ;;  %v394_v52 = vadd.f32 %v393_v45, %v1341_v18 }
  0xff   : > { %v396_v49 = vadd.f32 %v395_v48, %v1336_v16  ;;  %v435_v50 = vpop.f32.mrb[6].mxu1  ;;  %v397_v51 = vpop.f32.mrb[7].mxu0  ;;  %v462_v56 = vmax.f32 %v392_v43, 0.0  ;;  %v434_v57 = vadd.f32 %v433_v47, %v1341_v18 }
 0x100   : > { %v436_v53 = vadd.f32 %v435_v50, %v1336_v16  ;;  %v398_v54 = vadd.f32 %v397_v51, %v1341_v18  ;;  %v437_v55 = vpop.f32.mrb[7].mxu1  ;;  %v470_v60 = vmax.f32 %v432_v46, 0.0 }
 0x101   : > { %v463_v58 = vmax.f32 %v396_v49, 0.0  ;;  %v438_v59 = vadd.f32 %v437_v55, %v1341_v18 }
 0x102   : > { %v471_v61 = vmax.f32 %v436_v53, 0.0  ;;  %v942_v62 = vpack.c.bf16 %v398_v54, %v394_v52 }
 0x103   : > { %v902_v63 = vpack.c.bf16 %v463_v58, %v462_v56  ;;  %v962_v0 = vpack.c.bf16 %v438_v59, %v434_v57 }
 0x104   : > { %v922_v1 = vpack.c.bf16 %v471_v61, %v470_v60  ;;  %981 = vst [vmem:[%s1352_s12 + $0x8] sm:$0xff] %v942_v62   ;;  %v401_v2 = vpop.f32.mrb[8].mxu0 }
 0x105   : > { %974 = vst [vmem:[%s1355_s13 + $0x8] sm:$0xff] %v902_v63   ;;  %985 = vst [vmem:[%s1352_s12 + $0x28] sm:$0xff] %v962_v0   ;;  %v402_v3 = vadd.f32 %v401_v2, %v1336_v16  ;;  %v441_v4 = vpop.f32.mrb[8].mxu1  ;;  %v403_v5 = vpop.f32.mrb[9].mxu0 }
 0x106   : > { %978 = vst [vmem:[%s1355_s13 + $0x28] sm:$0xff] %v922_v1   ;;  %v442_v6 = vadd.f32 %v441_v4, %v1336_v16  ;;  %v443_v7 = vpop.f32.mrb[9].mxu1  ;;  %v405_v8 = vpop.f32.mrb[10].mxu0  ;;  %v404_v12 = vadd.f32 %v403_v5, %v1341_v18 }
 0x107   : > { %v406_v9 = vadd.f32 %v405_v8, %v1336_v16  ;;  %v445_v10 = vpop.f32.mrb[10].mxu1  ;;  %v407_v11 = vpop.f32.mrb[11].mxu0  ;;  %v464_v17 = vmax.f32 %v402_v3, 0.0  ;;  %v444_v19 = vadd.f32 %v443_v7, %v1341_v18 }
 0x108   : > { %v446_v13 = vadd.f32 %v445_v10, %v1336_v16  ;;  %v408_v14 = vadd.f32 %v407_v11, %v1341_v18  ;;  %v447_v15 = vpop.f32.mrb[11].mxu1  ;;  %v472_v22 = vmax.f32 %v442_v6, 0.0 }
 0x109   : > { %v465_v20 = vmax.f32 %v406_v9, 0.0  ;;  %v448_v21 = vadd.f32 %v447_v15, %v1341_v18 }
 0x10a   : > { %v473_v23 = vmax.f32 %v446_v13, 0.0  ;;  %v947_v24 = vpack.c.bf16 %v408_v14, %v404_v12 }
 0x10b   : > { %v907_v25 = vpack.c.bf16 %v465_v20, %v464_v17  ;;  %v967_v26 = vpack.c.bf16 %v448_v21, %v444_v19 }
 0x10c   : > { %v927_v27 = vpack.c.bf16 %v473_v23, %v472_v22  ;;  %982 = vst [vmem:[%s1352_s12 + $0x10] sm:$0xff] %v947_v24   ;;  %v411_v28 = vpop.f32.mrb[12].mxu0 }
 0x10d   : > { %975 = vst [vmem:[%s1355_s13 + $0x10] sm:$0xff] %v907_v25   ;;  %986 = vst [vmem:[%s1352_s12 + $0x30] sm:$0xff] %v967_v26   ;;  %v412_v29 = vadd.f32 %v411_v28, %v1336_v16  ;;  %v451_v30 = vpop.f32.mrb[12].mxu1  ;;  %v413_v31 = vpop.f32.mrb[13].mxu0 }
 0x10e   : > { %979 = vst [vmem:[%s1355_s13 + $0x30] sm:$0xff] %v927_v27   ;;  %v452_v32 = vadd.f32 %v451_v30, %v1336_v16  ;;  %v453_v33 = vpop.f32.mrb[13].mxu1  ;;  %v415_v34 = vpop.f32.mrb[14].mxu0  ;;  %v414_v38 = vadd.f32 %v413_v31, %v1341_v18 }
 0x10f   : > { %v416_v35 = vadd.f32 %v415_v34, %v1336_v16  ;;  %v455_v36 = vpop.f32.mrb[14].mxu1  ;;  %v417_v37 = vpop.f32.mrb[15].mxu0  ;;  %v466_v42 = vmax.f32 %v412_v29, 0.0  ;;  %v454_v43 = vadd.f32 %v453_v33, %v1341_v18 }
 0x110   : > { %v456_v39 = vadd.f32 %v455_v36, %v1336_v16  ;;  %v418_v40 = vadd.f32 %v417_v37, %v1341_v18  ;;  %v457_v41 = vpop.f32.mrb[15].mxu1  ;;  %v474_v46 = vmax.f32 %v452_v32, 0.0 }
 0x111   : > { %v467_v44 = vmax.f32 %v416_v35, 0.0  ;;  %v458_v45 = vadd.f32 %v457_v41, %v1341_v18 }
 0x112   : > { %v475_v47 = vmax.f32 %v456_v39, 0.0  ;;  %v952_v16 = vpack.c.bf16 %v418_v40, %v414_v38 }
 0x113   : > { %v912_v48 = vpack.c.bf16 %v467_v44, %v466_v42  ;;  %v972_v49 = vpack.c.bf16 %v458_v45, %v454_v43 }
 0x114   : > { %v932_v50 = vpack.c.bf16 %v475_v47, %v474_v46  ;;  %983 = vst [vmem:[%s1352_s12 + $0x18] sm:$0xff] %v952_v16  }
 0x115   : > { %976 = vst [vmem:[%s1355_s13 + $0x18] sm:$0xff] %v912_v48   ;;  %987 = vst [vmem:[%s1352_s12 + $0x38] sm:$0xff] %v972_v49  }
 0x116   : > { %980 = vst [vmem:[%s1355_s13 + $0x38] sm:$0xff] %v932_v50  }
 0x117   : > { %1093 = shalt.err (!%p1090_p7)
}
 0x118   : > { %s1094_s12 = scalar_lea.hbm %s1402_s30, 1024  ;;  %s1098_s5 = scalar_lea.hbm %s1503_s4, 4096 }
 0x119   : > { %p1095_p9 = scmp.ne.s32.totalorder %s1402_s30, %s1094_s12  ;;  %p1099_p12 = scmp.lt.u32.totalorder %s1402_s30, %s1503_s4 }
 0x11a   : > { %p1100_p13 = scmp.lt.u32.totalorder %s1098_s5, %s1094_s12  ;;  %p1102_p1 = scmp.lt.u32.totalorder %s1094_s12, %s1402_s30 }
 0x11b   : > { %p1096_p10 = pnand %p1095_p9, %p1289_p3 }
 0x11c   : > { %p1101_p0 = por %p1100_p13, %p1099_p12 }
 0x11d   : > { %p1097_p11 = pneg %p1096_p10 }
 0x11e   : > { %p1103_p2 = por %p1102_p1, %p1101_p0 }
 0x120   : > { %p1104_p4 = pnand %p1103_p2, %p1097_p11 }
 0x122   : > { %1107 = shalt.err (!%p1104_p4)
}
 0x123   : > { %s1210_s14 = smov 64   ;;  %s1211_s24 = smov 4  }
 0x124   : > { %991 = dma.vmem_to_hbm [thread:$0]  (%p1289_p3), %s1404_s10, 1024, %s1402_s30, %s642_s11, %s1210_s14, %s1210_s14, %s1211_s24  }
 0x125   : > { %s637_s27 = scalar_lea.sflag [#allocation3], %s1339_s9  ;;  %s1108_s12 = scalar_lea.vmem %s1412_s18, 1024 }
 0x126   : > { %p1109_p5 = scmp.ne.s32.totalorder %s1412_s18, %s1108_s12  ;;  %s1212_s13 = smov [#allocation2]  }
 0x127   : > { %s1112_s19 = sshll.u32 %s1212_s13, 4  ;;  %s1113_s19 = int_to_ptr.vmem [resolvable:$false] %s1112_s19 }
 0x128   : > { %p1110_p6 = pnand %p1109_p5, %p1289_p3  ;;  %s1114_s5 = scalar_lea.vmem %s1113_s19, 2048 }
 0x129   : > { %p1115_p9 = scmp.lt.s32.totalorder %s1412_s18, %s1113_s19  ;;  %p1116_p10 = scmp.lt.s32.totalorder %s1114_s5, %s1108_s12 }
 0x12a   : > { %p1111_p7 = pneg %p1110_p6 }
 0x12b   : > { %p1117_p11 = por %p1116_p10, %p1115_p9 }
 0x12d   : > { %p1118_p12 = pnand %p1117_p11, %p1111_p7 }
 0x12f   : > { %1121 = shalt.err (!%p1118_p12)
}
 0x130   : > { %s1122_s10 = scalar_lea.hbm %s1410_s8, 1024  ;;  %s1126_s6 = scalar_lea.hbm %s1502_s3, 4096 }
 0x131   : > { %p1123_p13 = scmp.ne.s32.totalorder %s1410_s8, %s1122_s10  ;;  %p1127_p2 = scmp.lt.u32.totalorder %s1410_s8, %s1502_s3 }
 0x132   : > { %p1128_p4 = scmp.lt.u32.totalorder %s1126_s6, %s1122_s10  ;;  %p1130_p6 = scmp.lt.u32.totalorder %s1122_s10, %s1410_s8 }
 0x133   : > { %p1124_p0 = pnand %p1123_p13, %p1289_p3 }
 0x134   : > { %p1129_p5 = por %p1128_p4, %p1127_p2 }
 0x135   : > { %p1125_p1 = pneg %p1124_p0 }
 0x136   : > { %p1131_p7 = por %p1130_p6, %p1129_p5 }
 0x138   : > { %p1132_p9 = pnand %p1131_p7, %p1125_p1 }
 0x13a   : > { %1135 = shalt.err (!%p1132_p9)
}
 0x13b   : > { %990 = dma.vmem_to_hbm [thread:$0]  (%p1289_p3), %s1412_s18, 1024, %s1410_s8, %s637_s27, %s1210_s14, %s1210_s14, %s1211_s24  }
 0x13c PF: > { %p1001_p10 = scmp.ge.s32.totalorder %s1206_s22, 2  ;;  %s690_s12 = sand.u32 1, %s1178_s15  }
 0x13d   : > { %s691_s19 = scalar_lea.sflag [#allocation3], %s690_s12 }
 0x13e   : > { %p995_p11 = pnand %p1001_p10, %p1298_p8 }
 0x140   : > { %1169 = dma.done.wait (!%p995_p11), %s691_s19, 1024  }
 0x141   : > { %1171 = vsyncadd (!%p995_p11), %s691_s19, 4294966272  ;;  %s700_s28 = scalar_lea.sflag [#allocation5], %s690_s12 }
 0x142   : > { %1173 = dma.done.wait (!%p995_p11), %s700_s28, 1024  }
 0x143   : > { %1175 = vsyncadd (!%p995_p11), %s700_s28, 4294966272  ;;  %s21_s22 = sadd.s32 1, %s1206_s22   ;;  %s1506_s15 = smov %s1182_s16 }
 0x144   : > { %p18_p12 = scmp.ge.s32.totalorder %s21_s22, 6   ;;  %s1507_s16 = smov %s1186_s17 }
 0x145   : > { %s1508_s17 = smov %s1307_s7  ;;  %s1509_s18 = smov %s1198_s20 }
 0x146   : > { %s1510_s19 = smov %s1202_s21  ;;  %s1511_s20 = smov %s1514_s25 }
 0x147   : > { %s1512_s21 = smov %s1518_s26  ;;  %20 = sbr.rel (!%p18_p12) target bundleno = 7 (0x7), region = 84 }
 0x14e   :  { %705 = vsyncpa [#allocation3], 1 }
 0x14f   :  { %707 = vsyncpa [#allocation3 + $0x1], 1 }
 0x150   :  { %708 = vsyncpa [#allocation5], 1 }
 0x151   :  { %710 = vsyncpa [#allocation5 + $0x1], 1 }

</bundles_post_ra>
